<compile_context>
chip_gen: v7x
topology: tpu7x:2x2x1
jax: 0.10.0
libtpu: 0.0.40
codegen_flags: <defaults>
</compile_context>

<pallas_src>
import numpy as np
import jax
import jax.numpy as jnp
from jax import lax
from jax.experimental import pallas as pl
from jax.experimental.pallas import tpu as pltpu


def _cdiv(a, b):
    return (a + b - 1) // b


def _round_up(x, m):
    return _cdiv(x, m) * m


def _reference(x, period, start, dim):
    """Plain-JAX reference mirroring the PyTorch index_add_ implementation."""
    dim = dim % x.ndim
    t_out = x.shape[dim] * period + start
    size = list(x.shape)
    size[dim] = t_out
    y = jnp.zeros(size, dtype=x.dtype)
    idx = jnp.arange(start, t_out, period)
    return y.at[(slice(None),) * dim + (idx,)].add(x)


# ----------------------------------------------------------------------------
# Static planning: split one output block into 128-lane-aligned sub-slabs.
# ----------------------------------------------------------------------------
def _plan_slabs(width_out, width_in, period, start):
    """Each entry (c_lo, w, u_lo, k, off): output lanes [c_lo, c_lo+w) of the
    block receive input lanes [u_lo, u_lo+k), sample j landing at lane
    c_lo + off + j*period.  All values are static Python ints."""
    slabs = []
    for s in range(_cdiv(width_out, 128)):
        c_lo = s * 128
        w = min(128, width_out - c_lo)
        u_lo = max(0, _cdiv(c_lo - start, period))
        u_hi = max(u_lo, min(_cdiv(c_lo + w - start, period), width_in))
        k = u_hi - u_lo
        off = start + u_lo * period - c_lo
        slabs.append((c_lo, w, u_lo, k, off))
    return slabs


def _build_sel_stack(slabs, k_max, period):
    """Stacked one-hot selection matrices, one (k_max, 128) slot per sub-slab."""
    sel = np.zeros((len(slabs), k_max, 128), dtype=np.float32)
    for s, (_c_lo, _w, _u_lo, k, off) in enumerate(slabs):
        for j in range(k):
            sel[s, j, off + j * period] = 1.0
    return sel


# ----------------------------------------------------------------------------
# Kernels.
# ----------------------------------------------------------------------------
def _make_dot_kernel(slabs, kblk, t_valid, needs_mask, precision):
    """Zero-stuffing via small one-hot dots; every store is a 128-aligned slab."""

    def kernel(x_ref, sel_ref, o_ref):
        rt = o_ref.shape[0]
        if needs_mask:
            # Unclamped global input-column origin of this block (the input
            # index_map may have clamped the actual DMA'd block).
            t0 = pl.program_id(1) * kblk
        for s, (c_lo, w, u_lo, k, _off) in enumerate(slabs):
            if k == 0:
                o_ref[:, c_lo:c_lo + w] = jnp.zeros((rt, w), o_ref.dtype)
                continue
            xs = x_ref[:, u_lo:u_lo + k]
            if needs_mask:
                # Zero columns beyond the valid signal so stale VMEM (possibly
                # NaN) cannot pollute valid outputs through the contraction.
                lim = t_valid - t0 - u_lo
                kk = lax.broadcasted_iota(jnp.int32, (1, k), 1)
                xs = jnp.where(kk < lim, xs, jnp.zeros_like(xs))
            sel = sel_ref[s, :k, :w]
            y = jnp.dot(xs, sel, preferred_element_type=jnp.float32,
                        precision=precision)
            o_ref[:, c_lo:c_lo + w] = y.astype(o_ref.dtype)

    return kernel


def _make_copy_kernel(n_cols, period, start):
    """Sparse regime (period > 128): zero-fill the block, then copy each input
    column to its (static) lane position.  No MXU, exact for any dtype."""

    def kernel(x_ref, o_ref):
        o_ref[...] = jnp.zeros(o_ref.shape, o_ref.dtype)
        for u in range(n_cols):
            c = start + u * period
            o_ref[:, c:c + 1] = x_ref[:, u:u + 1]

    return kernel


# ----------------------------------------------------------------------------
# Wrapper.
# ----------------------------------------------------------------------------
def interpolate(x, period, start=0, dim=-1):
    """Pallas-TPU equivalent of diffsptk Interpolation(period, start, dim)(x)."""
    assert period >= 1
    assert start >= 0
    dim = dim % x.ndim
    T = x.shape[dim]
    T_out = T * period + start

    # period == 1 is just an (optional) left zero-pad along `dim`.
    if period == 1:
        if start == 0:
            return x
        pad = [(0, 0)] * x.ndim
        pad[dim] = (start, 0)
        return jnp.pad(x, pad)

    if x.dtype not in (jnp.float32, jnp.bfloat16):
        # TODO(synk): integer / other float dtypes stay on the XLA scatter path
        # (v7x MXU has no integer mode; f16/f8 pass-through would need casts).
        return _reference(x, period, start, dim)

    # 2-D view: interpolation axis on lanes, everything else on rows.
    xt = jnp.moveaxis(x, dim, -1)
    lead = xt.shape[:-1]
    R = int(np.prod(lead)) if lead else 1
    x2 = xt.reshape(R, T)

    # start >= period folds into a left zero-pad of the *input* (1/period the
    # size of the output; no output-side padding/slicing anywhere).
    fs = start // period
    start_r = start % period
    if fs:
        x2 = jnp.pad(x2, ((0, 0), (fs, 0)))
    T_in = T + fs                      # T_in*period + start_r == T_out

    isz = x.dtype.itemsize
    sub = 8 if isz == 4 else 16        # sublane multiple (f32 / bf16)

    rows = R
    if rows < sub:                     # tiny inputs only
        x2 = jnp.pad(x2, ((0, sub - rows), (0, 0)))
        rows = sub

    # ---- generation-aware VMEM budgets -------------------------------------
    try:
        cap = int(getattr(pltpu.get_tpu_info(), "vmem_capacity_bytes", 64 << 20))
    except Exception:
        cap = 64 << 20
    big_vmem = cap >= (96 << 20)               # v5e/v6e: 128 MiB, v7x: 64 MiB
    io_budget = (28 << 20) if big_vmem else (14 << 20)
    vmem_limit = (64 << 20) if big_vmem else (32 << 20)
    rt_hw_cap = 1024 if big_vmem else 512
    target_blk = (2 << 20) if big_vmem else (1 << 20)

    # ---- choose block widths (lanes) ----------------------------------------
    unit = 128 * period                # minimum 128-aligned output block width
    nb_in = 1
    needs_mask = False
    if T_out <= unit:
        # Single column block: blocks equal the full (ragged) widths.
        w_in, w_out, n_cb = T_in, T_out, 1
    else:
        # Column-tiled: Kblk = 128*m input lanes <-> WC = Kblk*period output lanes.
        rt0 = min(rt_hw_cap, (rows // sub) * sub)
        m = max(1, target_blk // max(1, rt0 * unit * isz))
        m = min(m, max(1, 64 // period), 8, max(1, T_out // (2 * unit)))
        w_in = 128 * m
        w_out = w_in * period
        n_cb = _cdiv(T_out, w_out)
        nb_in = _cdiv(T_in, w_in)
        needs_mask = (nb_in * w_in != T_in) or (n_cb > nb_in)

    # ---- choose the row tile (nearly divides rows; even total grid steps) ---
    per_row = 2 * isz * (w_in + w_out)          # double-buffered in + out bytes
    rt_cap = min(rt_hw_cap, (rows // sub) * sub,
                 ((io_budget // per_row) // sub) * sub)
    if rt_cap < sub:
        # TODO(synk): pathological period (one output block exceeds VMEM even at
        # 8 rows); a dedicated scatter kernel would be needed — use XLA meanwhile.
        return _reference(x, period, start, dim)

    n_rb = _cdiv(rows, rt_cap)
    if (n_rb * n_cb) % 2 == 1 and rows >= 2 * sub:
        n_rb += 1                                # give both v7x TCs equal work
    rt = _round_up(_cdiv(rows, n_rb), sub)
    rt = max(sub, min(rt, (rows // sub) * sub))  # block must not exceed array rows
    n_rb = _cdiv(rows, rt)

    # ---- grid & specs --------------------------------------------------------
    if n_cb == 1:
        grid = (n_rb,)
        x_spec = pl.BlockSpec((rt, w_in), lambda i: (i, 0))
        out_spec = pl.BlockSpec((rt, w_out), lambda i: (i, 0))
        sel_map = lambda i: (0, 0, 0)
        semantics = ("parallel",)
    else:
        grid = (n_rb, n_cb)
        nb_last = nb_in - 1
        # Clamp so the block index never runs past the input; clamped blocks are
        # fully masked (dot kernel) or only write beyond T_out (copy kernel).
        x_spec = pl.BlockSpec((rt, w_in),
                              lambda i, j: (i, jnp.minimum(j, nb_last)))
        out_spec = pl.BlockSpec((rt, w_out), lambda i, j: (i, j))
        sel_map = lambda i, j: (0, 0, 0)
        semantics = ("parallel", "parallel")

    if period <= 128:
        slabs = _plan_slabs(w_out, w_in, period, start_r)
        k_max = max(1, max(k for (_, _, _, k, _) in slabs))
        sel_np = _build_sel_stack(slabs, k_max, period)
        sel_arr = jnp.asarray(sel_np, dtype=x.dtype)   # 0/1 exact in bf16 too
        precision = lax.Precision.HIGHEST if x.dtype == jnp.float32 else None
        kernel = _make_dot_kernel(slabs, w_in, T_in, needs_mask, precision)
        in_specs = [x_spec, pl.BlockSpec(sel_np.shape, sel_map)]
        operands = (x2, sel_arr)
    else:
        kernel = _make_copy_kernel(w_in, period, start_r)
        in_specs = [x_spec]
        operands = (x2,)

    y2 = pl.pallas_call(
        kernel,
        out_shape=jax.ShapeDtypeStruct((rows, T_out), x.dtype),
        grid_spec=pltpu.PrefetchScalarGridSpec(
            num_scalar_prefetch=0,
            grid=grid,
            in_specs=in_specs,
            out_specs=out_spec,
        ),
        compiler_params=pltpu.CompilerParams(
            dimension_semantics=semantics,
            vmem_limit_bytes=vmem_limit,
        ),
    )(*operands)

    if rows != R:                      # only for tiny (< one sublane tile) inputs
        y2 = y2[:R]
    yt = y2.reshape(lead + (T_out,))
    return jnp.moveaxis(yt, -1, dim)


# ----------------------------------------------------------------------------
# Self-test.
# ----------------------------------------------------------------------------
if __name__ == "__main__":
    key = jax.random.PRNGKey(0)

    # Small shapes consistent with the module: batch=2, channels=4, seq=16.
    period, start = 3, 1
    x = jax.random.normal(key, (2, 4, 16), dtype=jnp.float32)

    y = jax.block_until_ready(interpolate(x, period, start=start, dim=-1))
    assert y.shape == (2, 4, 16 * period + start)
    assert jnp.allclose(y, _reference(x, period, start, -1), atol=1e-5)

    # Interpolation along a middle axis.
    y_mid = jax.block_until_ready(interpolate(x, 2, start=0, dim=1))
    assert y_mid.shape == (2, 8, 16)
    assert jnp.allclose(y_mid, _reference(x, 2, 0, 1), atol=1e-5)

    # Docstring example: ramp(1,3), period=3, start=1 -> [0,1,0,0,2,0,0,3,0,0].
    ramp = jnp.array([1.0, 2.0, 3.0], dtype=jnp.float32)
    y_ex = jax.block_until_ready(interpolate(ramp, 3, start=1))
    expected = jnp.array([0., 1., 0., 0., 2., 0., 0., 3., 0., 0.], jnp.float32)
    assert jnp.allclose(y_ex, expected, atol=1e-6)

    # Longer sequence -> multi-column-block (2-D grid) path, f32.
    xl = jax.random.normal(jax.random.PRNGKey(1), (2, 4, 512), dtype=jnp.float32)
    yl = jax.block_until_ready(interpolate(xl, 2, start=1, dim=-1))
    assert yl.shape == (2, 4, 1025)
    assert jnp.allclose(yl, _reference(xl, 2, 1, -1), atol=1e-5)

    # bf16 path (native-dtype dot, f32 accumulation, exact pass-through).
    xb = jax.random.normal(jax.random.PRNGKey(2), (2, 4, 256), dtype=jnp.bfloat16)
    yb = jax.block_until_ready(interpolate(xb, 3, start=2, dim=-1))
    assert yb.shape == (2, 4, 770)
    assert jnp.allclose(yb.astype(jnp.float32),
                        _reference(xb, 3, 2, -1).astype(jnp.float32), atol=1e-6)

    # Large period -> sparse zero-fill + column-copy kernel.
    xp = jax.random.normal(jax.random.PRNGKey(3), (2, 4, 16), dtype=jnp.float32)
    yp = jax.block_until_ready(interpolate(xp, 160, start=7, dim=-1))
    assert yp.shape == (2, 4, 16 * 160 + 7)
    assert jnp.allclose(yp, _reference(xp, 160, 7, -1), atol=1e-6)

    print("KERNEL_OK")
</pallas_src>

<mosaic_0001>
module attributes {stable_mosaic.version = 11 : i64} {
  func.func @kernel(%arg0: i32, %arg1: memref<8x16xf32, #tpu.memory_space<vmem>>, %arg2: memref<1x16x128xf32, #tpu.memory_space<vmem>>, %arg3: memref<8x49xf32, #tpu.memory_space<vmem>>) attributes {dimension_semantics = [#tpu.dimension_semantics<parallel>], iteration_bounds = array<i64: 1>, scalar_prefetch = 0 : i64, scratch_operands = 0 : i64, tpu.core_type = #tpu.core_type<tc>, window_params = [{transform_indices = @transform_0, window_bounds = array<i64: 8, 16>}, {pipeline_mode = #tpu.pipeline_mode<synchronous>, transform_indices = @transform_1, window_bounds = array<i64: 1, 16, 128>}, {transform_indices = @transform_2, window_bounds = array<i64: 8, 49>}]} {
    %c0 = arith.constant 0 : index
    %c0_0 = arith.constant 0 : index
    %0 = vector.load %arg1[%c0, %c0_0] : memref<8x16xf32, #tpu.memory_space<vmem>>, vector<8x16xf32>
    %c0_1 = arith.constant 0 : index
    %c0_2 = arith.constant 0 : index
    %c0_3 = arith.constant 0 : index
    %1 = vector.load %arg2[%c0_1, %c0_2, %c0_3] : memref<1x16x128xf32, #tpu.memory_space<vmem>>, vector<1x16x49xf32>
    %2 = vector.shape_cast %1 : vector<1x16x49xf32> to vector<16x49xf32>
    %cst = arith.constant dense<0.000000e+00> : vector<8x49xf32>
    %3 = tpu.matmul %0, %2, %cst {dimension_numbers = #tpu.dot_dimension_numbers<[1], [0], [0], [1], [0, 0, 1, 1], [], []>, precision = #tpu.contract_precision<fp32>} : vector<8x16xf32>, vector<16x49xf32>, vector<8x49xf32> -> vector<8x49xf32>
    %c0_4 = arith.constant 0 : index
    %c0_5 = arith.constant 0 : index
    %4 = vector.load %arg3[%c0_4, %c0_5] : memref<8x49xf32, #tpu.memory_space<vmem>>, vector<8x49xf32>
    tpu.vector_store %arg3[%c0_4, %c0_5], %3 {strides = array<i32>} : memref<8x49xf32, #tpu.memory_space<vmem>>, vector<8x49xf32>,
    return
  }
  func.func @transform_0(%arg0: i32) -> (i32, i32) {
    %c0_i32 = arith.constant 0 : i32
    %c0_i32_0 = arith.constant 0 : i32
    return %arg0, %c0_i32 : i32, i32
  }
  func.func @transform_1(%arg0: i32) -> (i32, i32, i32) {
    %c0_i32 = arith.constant 0 : i32
    %c0_i32_0 = arith.constant 0 : i32
    %c0_i32_1 = arith.constant 0 : i32
    %c0_i32_2 = arith.constant 0 : i32
    return %c0_i32, %c0_i32_0, %c0_i32_1 : i32, i32, i32
  }
  func.func @transform_2(%arg0: i32) -> (i32, i32) {
    %c0_i32 = arith.constant 0 : i32
    %c0_i32_0 = arith.constant 0 : i32
    return %arg0, %c0_i32 : i32, i32
  }
}

</mosaic_0001>

<bundles_post_ra>
// kernel: tpu_custom_call.1
= control target key start
LH: loop header
LB: loop body
LE: loop exit
PB: predicated region body
PF: predicated region fallthrough
CT: control target
= control target key end

     0   :  { %7 = vsyncpa [#allocation3], 0  ;;  %s761_s0 = inlined_call_operand.hbm [shape: f32[8,16], index: 0, kind: input, shape index: {}]   ;;  %s762_s1 = inlined_call_operand.hbm [shape: f32[1,16,128], index: 1, kind: input, shape index: {}]   ;;  %s763_s2 = inlined_call_operand.hbm [shape: f32[8,49], index: 2, kind: output, shape index: {}]  }
   0x1   :  { %8 = vsyncpa [#allocation6], 0 }
   0x2   :  { %9 = vsyncpa [#allocation4], 0  ;;  %s689_s9 = smov [#allocation2]   ;;  %s690_s11 = smov [#allocation5]  }
   0x3   :  { %s16_s10 = sshll.u32 %s689_s9, 4  ;;  %s25_s12 = sshll.u32 %s690_s11, 4  ;;  %s17_s10 = int_to_ptr.vmem [resolvable:$true] %s16_s10  ;;  %s712_s12 = int_to_ptr.vmem [resolvable:$true] %s25_s12 }
   0x4   :  { %s617_s15 = scalar_lea.hbm %s761_s0, 128 }
   0x5   :  { %p618_p0 = scmp.ne.s32.totalorder %s761_s0, %s617_s15  ;;  %p621_p1 = scmp.lt.u32.totalorder %s617_s15, %s761_s0 }
   0x7   :  { %p623_p2 = pnand %p621_p1, %p618_p0 }
   0x9   :  { %626 = shalt.err (!%p623_p2)
}
   0xa   :  { %s627_s20 = scalar_lea.vmem %s17_s10, 128  ;;  %p632_p4 = scmp.lt.s32.totalorder %s17_s10, %s17_s10 }
   0xb   :  { %p628_p3 = scmp.ne.s32.totalorder %s17_s10, %s627_s20  ;;  %p633_p5 = scmp.lt.s32.totalorder %s627_s20, %s627_s20 }
   0xd   :  { %p634_p6 = por %p633_p5, %p632_p4 }
   0xf   :  { %p635_p7 = pnand %p634_p6, %p628_p3 }
  0x11   :  { %638 = shalt.err (!%p635_p7)
}
  0x12   :  { %19 = dma.hbm_to_vmem [thread:$0]  %s761_s0, 128, %s17_s10, [#allocation3]  }
  0x13   :  { %s639_s25 = scalar_lea.hbm %s762_s1, 256 }
  0x14   :  { %p640_p8 = scmp.ne.s32.totalorder %s762_s1, %s639_s25  ;;  %p643_p9 = scmp.lt.u32.totalorder %s639_s25, %s762_s1 }
  0x16   :  { %p645_p10 = pnand %p643_p9, %p640_p8 }
  0x18   :  { %648 = shalt.err (!%p645_p10)
}
  0x19   :  { %s649_s30 = scalar_lea.vmem %s712_s12, 256  ;;  %p654_p12 = scmp.lt.s32.totalorder %s712_s12, %s712_s12 }
  0x1a   :  { %p650_p11 = scmp.ne.s32.totalorder %s712_s12, %s649_s30  ;;  %p655_p13 = scmp.lt.s32.totalorder %s649_s30, %s649_s30 }
  0x1c   :  { %p656_p0 = por %p655_p13, %p654_p12 }
  0x1e   :  { %p657_p1 = pnand %p656_p0, %p650_p11 }
  0x20   :  { %660 = shalt.err (!%p657_p1)
}
  0x21   :  { %s691_s0 = smov 128   ;;  %s692_s3 = smov 8  }
  0x22   :  { %31 = dma.hbm_to_vmem [thread:$0]  %s762_s1, 256, %s712_s12, [#allocation6], %s691_s0, %s691_s0, %s692_s3  }
  0x23   :  { %683 = dma.done.wait [#allocation3], 128  }
  0x24   :  { %684 = vsyncadd [#allocation3], 4294967168 }
  0x25   :  { %685 = dma.done.wait [#allocation6], 256  }
  0x26   :  { %686 = vsyncadd [#allocation6], 4294967040  ;;  %v693_v0 = vmov 0.0|0.0   ;;  %vm694_vm0 = vmmov 0   ;;  %v695_v1 = vmov 0.0   ;;  %vm41_vm1 = vcmask 130048  }
  0x27   :  { %591 = vmatprep.subr.bf16.mxu0 %v693_v0  ;;  %565 = vmatprep.mubr.msk.f32.mxu0 %vm694_vm0, %v695_v1  ;;  %v39_v2 = vld [vmem:[#allocation5] sm:$0xff]  ;;  %v40_v3 = vld [vmem:[#allocation5 + $0x8] sm:$0xff]  ;;  %v38_v4 = vld [vmem:[#allocation2] sm:$0xff]  ;;  %s696_s1 = smov [#allocation7]   ;;  %vm504_vm2 = vcmask 400384  }
  0x28   :  { %582 = vmatprep.subr.bf16.mxu1 %v693_v0  ;;  %544 = vmatprep.mubr.msk.f32.mxu1 %vm694_vm0, %v695_v1  ;;  %v46_v5 = vand.u32 4294901760, %v39_v2  ;;  %v49_v6 = vand.u32 4294901760, %v40_v3  ;;  %v43_v7 = vsel %vm41_vm1, %v38_v4, 0  ;;  %s512_s6 = sshll.u32 %s696_s1, 4  ;;  %s513_s6 = int_to_ptr.vmem [resolvable:$true] %s512_s6 }
  0x29   :  { %v112_v8 = vand.u32 4294901760, %v43_v7  ;;  %s661_s7 = scalar_lea.vmem %s513_s6, 128  ;;  %p666_p3 = scmp.lt.s32.totalorder %s513_s6, %s513_s6 }
  0x2a   :  { %v583_v9 = vpack.c.bf16 %v49_v6, %v46_v5  ;;  %v124_v10 = vsub.f32 %v39_v2, %v46_v5  ;;  %v131_v11 = vsub.f32 %v40_v3, %v49_v6  ;;  %p662_p2 = scmp.ne.s32.totalorder %s513_s6, %s661_s7  ;;  %p667_p4 = scmp.lt.s32.totalorder %s661_s7, %s661_s7 }
  0x2b   :  { %v113_v12 = vsub.f32 %v43_v7, %v112_v8 }
  0x2c   :  { %593 = vmatpush3.bf16.msra.mxu0 %v583_v9  ;;  %584 = vmatpush3.bf16.msra.mxu1 %v583_v9  ;;  %v125_v13 = vand.u32 4294901760, %v124_v10  ;;  %v132_v14 = vand.u32 4294901760, %v131_v11  ;;  %v589_v24 = vpack.c.bf16 %v131_v11, %v124_v10  ;;  %p668_p5 = por %p667_p4, %p666_p3 }
  0x2d   :  { %v114_v15 = vand.u32 4294901760, %v113_v12  ;;  %585 = vmatprep.subr.bf16.mxu1 %v693_v0  ;;  %594 = vmatprep.subr.bf16.mxu0 %v693_v0 }
  0x2e   :  { %v126_v16 = vsub.f32 %v124_v10, %v125_v13  ;;  %v133_v17 = vsub.f32 %v131_v11, %v132_v14  ;;  %v595_v18 = vpack.c.bf16 %v132_v14, %v125_v13  ;;  %p669_p6 = pnand %p668_p5, %p662_p2 }
  0x2f   :  { %566 = vmatmul.mubr.f32.vlgmr.msra.gmra.mrb[0].mxu0 %v114_v15  ;;  %v115_v19 = vsub.f32 %v113_v12, %v114_v15 }
  0x30   :  { %v127_v20 = vand.u32 4294901760, %v126_v16  ;;  %v134_v21 = vand.u32 4294901760, %v133_v17  ;;  %596 = vmatpush3.bf16.msra.mxu0 %v595_v18  ;;  %572 = vmatprep.mubr.msk.f32.mxu0 %vm694_vm0, %v695_v1 }
  0x31   :  { %v116_v22 = vand.u32 4294901760, %v115_v19  ;;  %597 = vmatprep.subr.bf16.mxu0 %v693_v0 }
  0x32   :  { %v586_v23 = vpack.c.bf16 %v134_v21, %v127_v20 }
  0x33   :  { %545 = vmatmul.mubr.f32.vlgmr.msra.gmra.mrb[0].mxu1 %v116_v22 }
  0x34   :  { %587 = vmatpush3.bf16.msra.mxu1 %v586_v23  ;;  %551 = vmatprep.mubr.msk.f32.mxu1 %vm694_vm0, %v695_v1 }
  0x35   :  { %588 = vmatprep.subr.bf16.mxu1 %v693_v0 }
  0x37   :  { %573 = vmatmul.mubr.f32.vlgmr.msra.gmra.mrb[0].mxu0 %v112_v8 }
  0x38   :  { %599 = vmatpush3.bf16.msra.mxu0 %v583_v9  ;;  %579 = vmatprep.mubr.msk.f32.mxu0 %vm694_vm0, %v695_v1 }
  0x3b   :  { %552 = vmatmul.mubr.f32.vlgmr.msra.gmra.mrb[0].mxu1 %v112_v8 }
  0x3c   :  { %590 = vmatpush3.bf16.msra.mxu1 %v589_v24  ;;  %558 = vmatprep.mubr.msk.f32.mxu1 %vm694_vm0, %v695_v1 }
  0x3f   :  { %580 = vmatmul.mubr.f32.vlgmr.msra.gmra.mrb[0].mxu0 %v112_v8 }
  0x43   :  { %559 = vmatmul.mubr.f32.vlgmr.msra.gmra.mrb[0].mxu1 %v113_v12 }
 0x112   :  { %v500_v25 = vpop.f32.mrb[0].mxu0 }
 0x113   :  { %v581_v26 = vpop.f32.mrb[1].mxu0 }
 0x116   :  { %v275_v27 = vpop.f32.mrb[0].mxu1 }
 0x117   :  { %v600_v28 = vadd.f32 %v500_v25, %v275_v27  ;;  %v560_v29 = vpop.f32.mrb[1].mxu1 }
 0x119   :  { %505 = vst.msk [vmem:[#allocation7] sm:$0xff] %vm504_vm2, %v600_v28 }
 0x11a   :  { %672 = shalt.err (!%p669_p6)
}
 0x11b   :  { %s673_s10 = scalar_lea.hbm %s763_s2, 128 }
 0x11c   :  { %p674_p7 = scmp.ne.s32.totalorder %s763_s2, %s673_s10  ;;  %p677_p8 = scmp.lt.u32.totalorder %s673_s10, %s763_s2 }
 0x11e   :  { %p679_p9 = pnand %p677_p8, %p674_p7 }
 0x120   :  { %682 = shalt.err (!%p679_p9)
}
 0x121   :  { %515 = dma.vmem_to_hbm [thread:$0]  %s513_s6, 128, %s763_s2, [#allocation4]  }
 0x122   :  { %687 = dma.done.wait [#allocation4], 128  }
 0x123   :  { %688 = vsyncadd [#allocation4], 4294967168 }
 0x124   :  { %519 = vsyncpa [#allocation3], 1 }
 0x125   :  { %520 = vsyncpa [#allocation6], 1 }
 0x126   :  { %521 = vsyncpa [#allocation4], 1 }

</bundles_post_ra>
